<compile_context>
chip_gen: v5e
topology: v5e:2x2
jax: 0.10.0
libtpu: 0.0.40
codegen_flags: <defaults>
</compile_context>

<pallas_src>
import functools

import jax
import jax.numpy as jnp
from jax import lax
from jax.experimental import pallas as pl
from jax.experimental.pallas import tpu as pltpu

# Fixed hidden widths from the PyTorch module.
FC1 = 256            # fc1 output
FC2 = 128            # fc2 output
FC3 = 64             # fc3 output (lane-padded to LANE inside the packed weights)
LANE = 128           # TPU lane width
TILE_B_MAX = 2048    # max rows per grid step (perf review: amortize per-step overhead)
MIN_SPLIT_B = 512    # if B >= 2*MIN_SPLIT_B, use >= 2 batch tiles (v7x: feed both TCs)


def _cdiv(a, b):
    return -(-a // b)


def _round_up(n, m):
    return _cdiv(n, m) * m


def dqn_kernel(x_ref, w1_ref, w23_ref, w4t_ref, b123_ref, b4_ref, o_ref):
    """Fused 4-layer MLP forward for one batch tile, output emitted transposed.

    x_ref    : (tile_b, S)         f32   -- streamed batch tile
    w1_ref   : (S, 256)            bf16  -- resident
    w23_ref  : (256 + 128, 128)    bf16  -- resident, fc2 | fc3(lane-padded) stacked on rows
    w4t_ref  : (A_pad, 128)        f32   -- resident, fc4 weight transposed + padded
    b123_ref : (1, 256+128+128)    f32   -- resident, b1 | b2 | b3(pad)
    b4_ref   : (A_pad, 1)          f32   -- resident, fc4 bias as a column
    o_ref    : (A_pad, tile_b)     f32   -- transposed, lane-dense Q-value tile
    """
    x = x_ref[...].astype(jnp.bfloat16)

    w1 = w1_ref[...]                                   # (S, 256)
    w2 = w23_ref[0:FC1, :]                             # (256, 128)
    w3 = w23_ref[FC1:FC1 + LANE, :]                    # (128, 128) (cols 64:128 are zero)
    w4t = w4t_ref[...].astype(jnp.bfloat16)            # (A_pad, 128)

    b1 = b123_ref[:, 0:FC1]
    b2 = b123_ref[:, FC1:FC1 + FC2]
    b3 = b123_ref[:, FC1 + FC2:FC1 + FC2 + LANE]
    b4 = b4_ref[...]                                   # (A_pad, 1)

    h1 = jnp.dot(x, w1, preferred_element_type=jnp.float32) + b1
    h1 = jnp.maximum(h1, 0.0).astype(jnp.bfloat16)

    h2 = jnp.dot(h1, w2, preferred_element_type=jnp.float32) + b2
    h2 = jnp.maximum(h2, 0.0).astype(jnp.bfloat16)

    h3 = jnp.dot(h2, w3, preferred_element_type=jnp.float32) + b3
    h3 = jnp.maximum(h3, 0.0).astype(jnp.bfloat16)     # (tile_b, 128); cols 64:128 == 0

    # Final layer computed transposed: contract (A_pad, 128) with (tile_b, 128) on the
    # 128-dim -> (A_pad, tile_b).  Keeps the output tiny AND lane-dense.
    out_t = lax.dot_general(
        w4t, h3, dimension_numbers=(((1,), (1,)), ((), ())),
        preferred_element_type=jnp.float32) + b4
    o_ref[...] = out_t.astype(o_ref.dtype)


def pack_params(params):
    """Pad narrow dims to lane/sublane widths, cast big weights to bf16 (done once)."""
    w1, b1 = params["fc1"]     # (S, 256), (1, 256)
    w2, b2 = params["fc2"]     # (256, 128), (1, 128)
    w3, b3 = params["fc3"]     # (128, 64), (1, 64)
    w4, b4 = params["fc4"]     # (64, A), (1, A)
    action_size = int(w4.shape[1])
    a_pad = max(8, _round_up(action_size, 8))

    # fc3: pad output 64 -> 128 with zero columns (padded h3 cols stay ReLU(0) == 0).
    w3p = jnp.pad(w3, ((0, 0), (0, LANE - FC3)))
    b3p = jnp.pad(b3, ((0, 0), (0, LANE - FC3)))
    # fc4 transposed: (A, 64) -> (A_pad, 128); zero cols match h3's zero padded columns.
    w4t = jnp.pad(w4.T, ((0, a_pad - action_size), (0, LANE - FC3))).astype(jnp.float32)
    b4c = jnp.pad(b4.T, ((0, a_pad - action_size), (0, 0))).astype(jnp.float32)  # (A_pad, 1)

    w1_bf = w1.astype(jnp.bfloat16)                                   # (S, 256)
    w23 = jnp.concatenate([w2, w3p], axis=0).astype(jnp.bfloat16)     # (384, 128)
    b123 = jnp.concatenate([b1, b2, b3p], axis=1).astype(jnp.float32)  # (1, 512)
    return w1_bf, w23, w4t, b123, b4c, action_size


def _choose_tiling(B, tile_b_max):
    """Pick batch tiling: big tiles, minimal padding, >=2 tiles when B is large."""
    num_tiles = _cdiv(B, tile_b_max)
    if B >= 2 * MIN_SPLIT_B:
        num_tiles = max(num_tiles, 2)          # v7x: give both TensorCores work
    tile_b = _round_up(_cdiv(B, num_tiles), LANE)   # lane-dense transposed output blocks
    b_pad = tile_b * num_tiles
    return tile_b, b_pad, num_tiles


@functools.partial(jax.jit, static_argnames=("action_size", "tile_b_max"))
def deep_q_net_forward(x, w1_bf, w23, w4t, b123, b4c, *, action_size,
                       tile_b_max=TILE_B_MAX):
    """x: [B, state_size] f32 -> [B, action_size] f32 Q-values."""
    B, S = x.shape
    a_pad = w4t.shape[0]
    tile_b, b_pad, num_tiles = _choose_tiling(B, tile_b_max)
    if b_pad != B:
        x = jnp.pad(x, ((0, b_pad - B), (0, 0)))

    out_t = pl.pallas_call(
        dqn_kernel,
        out_shape=jax.ShapeDtypeStruct((a_pad, b_pad), jnp.float32),
        grid_spec=pltpu.PrefetchScalarGridSpec(
            num_scalar_prefetch=0,
            grid=(num_tiles,),
            in_specs=[
                pl.BlockSpec((tile_b, S), lambda i: (i, 0)),              # streamed x tile
                pl.BlockSpec((S, FC1), lambda i: (0, 0)),                 # resident w1
                pl.BlockSpec((FC1 + LANE, LANE), lambda i: (0, 0)),       # resident w2|w3
                pl.BlockSpec((a_pad, LANE), lambda i: (0, 0)),            # resident w4^T
                pl.BlockSpec((1, FC1 + FC2 + LANE), lambda i: (0, 0)),    # resident b1|b2|b3
                pl.BlockSpec((a_pad, 1), lambda i: (0, 0)),               # resident b4
            ],
            out_specs=pl.BlockSpec((a_pad, tile_b), lambda i: (0, i)),    # lane-dense output
        ),
        compiler_params=pltpu.CompilerParams(
            dimension_semantics=("parallel",),        # batch tiles shard across v7x's 2 TCs
            vmem_limit_bytes=32 * 1024 * 1024,        # generous headroom on all generations
        ),
    )(x, w1_bf, w23, w4t, b123, b4c)

    # Tiny (A_pad, b_pad) slab -> (B, action_size); cheap XLA transpose of a small array.
    return out_t[:action_size, :B].T


def init_params(key, state_size, action_size):
    """nn.Linear default init U(-1/sqrt(fan_in), +1/sqrt(fan_in)).
    Weights stored [in_features, out_features] (transposed vs PyTorch); bias [1, out]."""
    dims = [(state_size, FC1), (FC1, FC2), (FC2, FC3), (FC3, action_size)]
    names = ["fc1", "fc2", "fc3", "fc4"]
    params = {}
    for name, (fan_in, fan_out) in zip(names, dims):
        key, kw, kb = jax.random.split(key, 3)
        bound = 1.0 / float(fan_in) ** 0.5
        w = jax.random.uniform(kw, (fan_in, fan_out), jnp.float32, -bound, bound)
        b = jax.random.uniform(kb, (1, fan_out), jnp.float32, -bound, bound)
        params[name] = (w, b)
    return params


def reference_forward_f32(x, params):
    """Pure-JAX f32 reference (original module semantics)."""
    h = x
    for name in ("fc1", "fc2", "fc3"):
        w, b = params[name]
        h = jnp.maximum(h @ w + b, 0.0)
    w, b = params["fc4"]
    return h @ w + b


def reference_forward_bf16(x, params):
    """Pure-JAX reference emulating the kernel's mixed precision."""
    def layer(h, w, b, relu):
        y = jnp.dot(h.astype(jnp.bfloat16), w.astype(jnp.bfloat16),
                    preferred_element_type=jnp.float32) + b
        return jnp.maximum(y, 0.0) if relu else y
    h = layer(x, *params["fc1"], True)
    h = layer(h, *params["fc2"], True)
    h = layer(h, *params["fc3"], True)
    return layer(h, *params["fc4"], False)


if __name__ == "__main__":
    state_size = 16
    action_size = 4

    key = jax.random.PRNGKey(0)
    key, kp = jax.random.split(key)
    params = init_params(kp, state_size, action_size)
    w1_bf, w23, w4t, b123, b4c, act = pack_params(params)

    # batch=8   : single small tile (tile_b=128).
    # batch=300 : ragged, right-sized to tile_b=384, grid=1.
    # batch=1100: forces >=2 tiles (tile_b=640, grid=2) -> exercises multi-tile index_maps.
    for batch in (8, 300, 1100):
        key, kx = jax.random.split(key)
        x = jax.random.normal(kx, (batch, state_size), jnp.float32)

        out = deep_q_net_forward(x, w1_bf, w23, w4t, b123, b4c,
                                 action_size=act, tile_b_max=TILE_B_MAX)
        out = jax.block_until_ready(out)
        assert out.shape == (batch, action_size)

        ref_bf16 = reference_forward_bf16(x, params)   # faithful to kernel precision
        ref_f32 = reference_forward_f32(x, params)     # original f32 module semantics
        assert jnp.allclose(out, ref_bf16, atol=1e-2, rtol=1e-2), "mismatch vs bf16 reference"
        assert jnp.allclose(out, ref_f32, atol=5e-2, rtol=5e-2), "mismatch vs f32 reference"

    print("KERNEL_OK")
</pallas_src>

<mosaic_0001>
module attributes {stable_mosaic.version = 11 : i64} {
  func.func @dqn_kernel(%arg0: i32, %arg1: memref<128x16xf32, #tpu.memory_space<vmem>>, %arg2: memref<16x256xbf16, #tpu.memory_space<vmem>>, %arg3: memref<384x128xbf16, #tpu.memory_space<vmem>>, %arg4: memref<8x128xf32, #tpu.memory_space<vmem>>, %arg5: memref<1x512xf32, #tpu.memory_space<vmem>>, %arg6: memref<8x1xf32, #tpu.memory_space<vmem>>, %arg7: memref<8x128xf32, #tpu.memory_space<vmem>>) attributes {dimension_semantics = [#tpu.dimension_semantics<parallel>], iteration_bounds = array<i64: 1>, scalar_prefetch = 0 : i64, scratch_operands = 0 : i64, tpu.core_type = #tpu.core_type<tc>, window_params = [{transform_indices = @transform_0, window_bounds = array<i64: 128, 16>}, {pipeline_mode = #tpu.pipeline_mode<synchronous>, transform_indices = @transform_1, window_bounds = array<i64: 16, 256>}, {pipeline_mode = #tpu.pipeline_mode<synchronous>, transform_indices = @transform_2, window_bounds = array<i64: 384, 128>}, {pipeline_mode = #tpu.pipeline_mode<synchronous>, transform_indices = @transform_3, window_bounds = array<i64: 8, 128>}, {pipeline_mode = #tpu.pipeline_mode<synchronous>, transform_indices = @transform_4, window_bounds = array<i64: 1, 512>}, {pipeline_mode = #tpu.pipeline_mode<synchronous>, transform_indices = @transform_5, window_bounds = array<i64: 8, 1>}, {transform_indices = @transform_6, window_bounds = array<i64: 8, 128>}]} {
    %c0 = arith.constant 0 : index
    %c0_0 = arith.constant 0 : index
    %0 = vector.load %arg1[%c0, %c0_0] : memref<128x16xf32, #tpu.memory_space<vmem>>, vector<128x16xf32>
    %1 = arith.truncf %0 : vector<128x16xf32> to vector<128x16xbf16>
    %c0_1 = arith.constant 0 : index
    %c0_2 = arith.constant 0 : index
    %2 = vector.load %arg2[%c0_1, %c0_2] : memref<16x256xbf16, #tpu.memory_space<vmem>>, vector<16x256xbf16>
    %c0_3 = arith.constant 0 : index
    %c0_4 = arith.constant 0 : index
    %3 = vector.load %arg3[%c0_3, %c0_4] : memref<384x128xbf16, #tpu.memory_space<vmem>>, vector<256x128xbf16>
    %c256 = arith.constant 256 : index
    %c0_5 = arith.constant 0 : index
    %4 = vector.load %arg3[%c256, %c0_5] : memref<384x128xbf16, #tpu.memory_space<vmem>>, vector<128x128xbf16>
    %c0_6 = arith.constant 0 : index
    %c0_7 = arith.constant 0 : index
    %5 = vector.load %arg4[%c0_6, %c0_7] : memref<8x128xf32, #tpu.memory_space<vmem>>, vector<8x128xf32>
    %6 = arith.truncf %5 : vector<8x128xf32> to vector<8x128xbf16>
    %c0_8 = arith.constant 0 : index
    %c0_9 = arith.constant 0 : index
    %7 = vector.load %arg5[%c0_8, %c0_9] : memref<1x512xf32, #tpu.memory_space<vmem>>, vector<1x256xf32>
    %c0_10 = arith.constant 0 : index
    %c256_11 = arith.constant 256 : index
    %8 = vector.load %arg5[%c0_10, %c256_11] : memref<1x512xf32, #tpu.memory_space<vmem>>, vector<1x128xf32>
    %c0_12 = arith.constant 0 : index
    %c384 = arith.constant 384 : index
    %9 = vector.load %arg5[%c0_12, %c384] : memref<1x512xf32, #tpu.memory_space<vmem>>, vector<1x128xf32>
    %c0_13 = arith.constant 0 : index
    %c0_14 = arith.constant 0 : index
    %10 = vector.load %arg6[%c0_13, %c0_14] : memref<8x1xf32, #tpu.memory_space<vmem>>, vector<8x1xf32>
    %cst = arith.constant dense<0.000000e+00> : vector<128x256xf32>
    %11 = tpu.matmul %1, %2, %cst {dimension_numbers = #tpu.dot_dimension_numbers<[1], [0], [0], [1], [0, 0, 1, 1], [], []>} : vector<128x16xbf16>, vector<16x256xbf16>, vector<128x256xf32> -> vector<128x256xf32>
    %12 = vector.broadcast %7 : vector<1x256xf32> to vector<128x256xf32>
    %13 = arith.addf %11, %12 : vector<128x256xf32>
    %cst_15 = arith.constant 0.000000e+00 : f32
    %14 = vector.broadcast %cst_15 : f32 to vector<128x256xf32>
    %15 = arith.maximumf %13, %14 : vector<128x256xf32>
    %16 = arith.truncf %15 : vector<128x256xf32> to vector<128x256xbf16>
    %cst_16 = arith.constant dense<0.000000e+00> : vector<128x128xf32>
    %17 = tpu.matmul %16, %3, %cst_16 {dimension_numbers = #tpu.dot_dimension_numbers<[1], [0], [0], [1], [0, 0, 1, 1], [], []>} : vector<128x256xbf16>, vector<256x128xbf16>, vector<128x128xf32> -> vector<128x128xf32>
    %18 = vector.broadcast %8 : vector<1x128xf32> to vector<128x128xf32>
    %19 = arith.addf %17, %18 : vector<128x128xf32>
    %cst_17 = arith.constant 0.000000e+00 : f32
    %20 = vector.broadcast %cst_17 : f32 to vector<128x128xf32>
    %21 = arith.maximumf %19, %20 : vector<128x128xf32>
    %22 = arith.truncf %21 : vector<128x128xf32> to vector<128x128xbf16>
    %cst_18 = arith.constant dense<0.000000e+00> : vector<128x128xf32>
    %23 = tpu.matmul %22, %4, %cst_18 {dimension_numbers = #tpu.dot_dimension_numbers<[1], [0], [0], [1], [0, 0, 1, 1], [], []>} : vector<128x128xbf16>, vector<128x128xbf16>, vector<128x128xf32> -> vector<128x128xf32>
    %24 = vector.broadcast %9 : vector<1x128xf32> to vector<128x128xf32>
    %25 = arith.addf %23, %24 : vector<128x128xf32>
    %cst_19 = arith.constant 0.000000e+00 : f32
    %26 = vector.broadcast %cst_19 : f32 to vector<128x128xf32>
    %27 = arith.maximumf %25, %26 : vector<128x128xf32>
    %28 = arith.truncf %27 : vector<128x128xf32> to vector<128x128xbf16>
    %cst_20 = arith.constant dense<0.000000e+00> : vector<8x128xf32>
    %29 = tpu.matmul %6, %28, %cst_20 {dimension_numbers = #tpu.dot_dimension_numbers<[1], [1], [0], [0], [0, 0, 1, 0], [], []>} : vector<8x128xbf16>, vector<128x128xbf16>, vector<8x128xf32> -> vector<8x128xf32>
    %30 = vector.broadcast %10 : vector<8x1xf32> to vector<8x128xf32>
    %31 = arith.addf %29, %30 : vector<8x128xf32>
    %c0_21 = arith.constant 0 : index
    %c0_22 = arith.constant 0 : index
    %32 = vector.load %arg7[%c0_21, %c0_22] : memref<8x128xf32, #tpu.memory_space<vmem>>, vector<8x128xf32>
    tpu.vector_store %arg7[%c0_21, %c0_22], %31 {strides = array<i32>} : memref<8x128xf32, #tpu.memory_space<vmem>>, vector<8x128xf32>,
    return
  }
  func.func @transform_0(%arg0: i32) -> (i32, i32) {
    %c0_i32 = arith.constant 0 : i32
    %c0_i32_0 = arith.constant 0 : i32
    return %arg0, %c0_i32 : i32, i32
  }
  func.func @transform_1(%arg0: i32) -> (i32, i32) {
    %c0_i32 = arith.constant 0 : i32
    %c0_i32_0 = arith.constant 0 : i32
    %c0_i32_1 = arith.constant 0 : i32
    return %c0_i32, %c0_i32_0 : i32, i32
  }
  func.func @transform_2(%arg0: i32) -> (i32, i32) {
    %c0_i32 = arith.constant 0 : i32
    %c0_i32_0 = arith.constant 0 : i32
    %c0_i32_1 = arith.constant 0 : i32
    return %c0_i32, %c0_i32_0 : i32, i32
  }
  func.func @transform_3(%arg0: i32) -> (i32, i32) {
    %c0_i32 = arith.constant 0 : i32
    %c0_i32_0 = arith.constant 0 : i32
    %c0_i32_1 = arith.constant 0 : i32
    return %c0_i32, %c0_i32_0 : i32, i32
  }
  func.func @transform_4(%arg0: i32) -> (i32, i32) {
    %c0_i32 = arith.constant 0 : i32
    %c0_i32_0 = arith.constant 0 : i32
    %c0_i32_1 = arith.constant 0 : i32
    return %c0_i32, %c0_i32_0 : i32, i32
  }
  func.func @transform_5(%arg0: i32) -> (i32, i32) {
    %c0_i32 = arith.constant 0 : i32
    %c0_i32_0 = arith.constant 0 : i32
    %c0_i32_1 = arith.constant 0 : i32
    return %c0_i32, %c0_i32_0 : i32, i32
  }
  func.func @transform_6(%arg0: i32) -> (i32, i32) {
    %c0_i32 = arith.constant 0 : i32
    %c0_i32_0 = arith.constant 0 : i32
    return %c0_i32, %arg0 : i32, i32
  }
}

</mosaic_0001>

<bundles_post_ra>
// kernel: deep_q_net_forward.1
= control target key start
LH: loop header
LB: loop body
LE: loop exit
PB: predicated region body
PF: predicated region fallthrough
CT: control target
= control target key end

     0   :  { %11 = vsyncpa [#allocation3], 0  ;;  %s857_s24 = smov [#allocation2]   ;;  %s858_s26 = smov 64   ;;  %s1047_s0 = inlined_call_operand.vmem [shape: f32[128,16], index: 0, kind: input, shape index: {}]   ;;  %s1048_s1 = inlined_call_operand.vmem [shape: bf16[16,256], index: 1, kind: input, shape index: {}]   ;;  %s1049_s2 = inlined_call_operand.hbm [shape: bf16[384,128], index: 2, kind: input, shape index: {}]   ;;  %s1050_s3 = inlined_call_operand.vmem [shape: f32[8,128], index: 3, kind: input, shape index: {}]   ;;  %s1051_s4 = inlined_call_operand.vmem [shape: f32[1,512], index: 4, kind: input, shape index: {}]   ;;  %s1052_s5 = inlined_call_operand.vmem [shape: f32[8,1], index: 5, kind: input, shape index: {}]   ;;  %s1053_s6 = inlined_call_operand.vmem [shape: f32[8,128], index: 6, kind: output, shape index: {}]  }
   0x1   :  { %s20_s23 = sshll.u32 %s1049_s2, 4  ;;  %s22_s25 = sshll.u32 %s857_s24, 4  ;;  %s21_s23 = int_to_ptr.hbm [resolvable:$true] %s20_s23  ;;  %s23_s25 = int_to_ptr.vmem [resolvable:$true] %s22_s25 }
   0x2   :  { %s859_s27 = smov 4  }
   0x3   :  { %28 = dma.hbm_to_vmem [thread:$0]  %s21_s23, 3072, %s23_s25, [#allocation3], %s858_s26, %s858_s26, %s859_s27  }
   0x4   :  { %855 = dma.done.wait [#allocation3], 3072  }
   0x5   :  { %856 = vsyncadd [#allocation3], 4294964224  ;;  %v677_v0 = vld [vmem:[%s1048_s1] sm:$0xf]  ;;  %v796_v1 = vld [vmem:[%s1048_s1 + $0x4] sm:$0xf0] }
   0x6   :  { %v40_v2 = vld [vmem:[%s1047_s0] sm:$0xff]  ;;  %v678_v3 = vor.u32 %v796_v1, %v677_v0  ;;  %v41_v4 = vld [vmem:[%s1047_s0 + $0x8] sm:$0xff]  ;;  %vm135_vm0 = vcmask 130048   ;;  %v46_v12 = vld [vmem:[%s1047_s0 + $0x30] sm:$0xff] }
   0x7   :  { %v44_v5 = vld [vmem:[%s1047_s0 + $0x20] sm:$0xff]  ;;  %v45_v6 = vld [vmem:[%s1047_s0 + $0x28] sm:$0xff]  ;;  %v56_v7 = vpack.c.bf16 %v41_v4, %v40_v2  ;;  %v47_v13 = vld [vmem:[%s1047_s0 + $0x38] sm:$0xff] }
   0x8   :  { %v58_v8 = vpack.c.bf16 %v45_v6, %v44_v5  ;;  %v795_v9 = vld [vmem:[%s1048_s1 + $0x4] sm:$0xf]  ;;  %v679_v10 = vld [vmem:[%s1048_s1 + $0x8] sm:$0xf0]  ;;  %167 = vmatpush.bf16.msra.mxu0 %v678_v3  ;;  %821 = vmatpush.bf16.msra.mxu1 %v678_v3  ;;  %v59_v14 = vpack.c.bf16 %v47_v13, %v46_v12  ;;  %v42_v15 = vld [vmem:[%s1047_s0 + $0x10] sm:$0xff] }
   0x9   :  { %v682_v11 = vor.u32 %v795_v9, %v679_v10  ;;  %822 = vmatpush.bf16.msra.mxu2 %v678_v3  ;;  %823 = vmatpush.bf16.msra.mxu3 %v678_v3  ;;  %v43_v16 = vld [vmem:[%s1047_s0 + $0x18] sm:$0xff]  ;;  %v48_v18 = vld [vmem:[%s1047_s0 + $0x40] sm:$0xff]  ;;  %v49_v19 = vld [vmem:[%s1047_s0 + $0x48] sm:$0xff] }
   0xa   :  { %v57_v17 = vpack.c.bf16 %v43_v16, %v42_v15  ;;  %v60_v20 = vpack.c.bf16 %v49_v19, %v48_v18  ;;  %v50_v21 = vld [vmem:[%s1047_s0 + $0x50] sm:$0xff]  ;;  %v51_v22 = vld [vmem:[%s1047_s0 + $0x58] sm:$0xff]  ;;  %v52_v24 = vld [vmem:[%s1047_s0 + $0x60] sm:$0xff] }
   0xb   :  { %683 = vmatmul.msk.bf16.vlgmr.msra.gmra.mxu0 %vm135_vm0, %v56_v7  ;;  %685 = vmatmul.msk.bf16.vlgmr.msra.gmra.mxu1 %vm135_vm0, %v58_v8  ;;  %v61_v23 = vpack.c.bf16 %v51_v22, %v50_v21  ;;  %v53_v25 = vld [vmem:[%s1047_s0 + $0x68] sm:$0xff]  ;;  %v54_v27 = vld [vmem:[%s1047_s0 + $0x70] sm:$0xff]  ;;  %v55_v28 = vld [vmem:[%s1047_s0 + $0x78] sm:$0xff] }
   0xc   :  { %216 = vmatpush.bf16.msrb.mxu1 %v682_v11  ;;  %686 = vmatmul.msk.bf16.vlgmr.msra.gmra.mxu2 %vm135_vm0, %v59_v14  ;;  %v62_v26 = vpack.c.bf16 %v53_v25, %v52_v24  ;;  %v804_v29 = vld [vmem:[#allocation2 + $0x38] sm:$0xff]  ;;  %v63_v30 = vpack.c.bf16 %v55_v28, %v54_v27  ;;  %v803_v31 = vld [vmem:[#allocation2 + $0x30] sm:$0xff]  ;;  %v802_v32 = vld [vmem:[#allocation2 + $0x28] sm:$0xff] }
   0xd   :  { %405 = vmatpush.bf16.msrb.mxu2 %v804_v29  ;;  %v801_v33 = vld [vmem:[#allocation2 + $0x20] sm:$0xff]  ;;  %v800_v34 = vld [vmem:[#allocation2 + $0x18] sm:$0xff]  ;;  %v799_v36 = vld [vmem:[#allocation2 + $0x10] sm:$0xff] }
   0xe   :  { %689 = vmatmul.msk.bf16.vlgmr.msra.gmra.mxu3 %vm135_vm0, %v62_v26  ;;  %v812_v35 = vld [vmem:[#allocation2 + $0x78] sm:$0xff]  ;;  %v811_v37 = vld [vmem:[#allocation2 + $0x70] sm:$0xff]  ;;  %v798_v38 = vld [vmem:[#allocation2 + $0x8] sm:$0xff] }
   0xf   :  { %454 = vmatpush.bf16.msrb.mxu3 %v812_v35  ;;  %v810_v39 = vld [vmem:[#allocation2 + $0x68] sm:$0xff]  ;;  %v797_v40 = vld [vmem:[#allocation2] sm:$0xff]  ;;  %v808_v42 = vld [vmem:[#allocation2 + $0x58] sm:$0xff] }
  0x10   :  { %v809_v41 = vld [vmem:[#allocation2 + $0x60] sm:$0xff]  ;;  %v807_v43 = vld [vmem:[#allocation2 + $0x50] sm:$0xff]  ;;  %v806_v44 = vld [vmem:[#allocation2 + $0x48] sm:$0xff] }
  0x11   :  { %406 = vmatpush.bf16.msrb.mxu2 %v803_v31  ;;  %v805_v45 = vld [vmem:[#allocation2 + $0x40] sm:$0xff] }
  0x12   :  { %v116_v46 = vld [vmem:[%s1051_s4] sm:$0x3] }
  0x13   :  { %455 = vmatpush.bf16.msrb.mxu3 %v811_v37  ;;  %v977_v49 = vperm.slane %v116_v46, 0  ;;  %v982_v59 = vperm.slane %v116_v46, 1 }
  0x15   :  { %407 = vmatpush.bf16.msrb.mxu2 %v802_v32 }
  0x17   :  { %456 = vmatpush.bf16.msrb.mxu3 %v810_v39 }
  0x19   :  { %408 = vmatpush.bf16.msrb.mxu2 %v801_v33 }
  0x1b   :  { %684 = vmatmul.msk.bf16.gmra.mxu0 %vm135_vm0, %v57_v17  ;;  %691 = vmatmul.msk.bf16.vlgmr.msrb.gmra.mxu1 %vm135_vm0, %v56_v7 }
  0x1c   :  { %687 = vmatmul.msk.bf16.gmra.mxu2 %vm135_vm0, %v60_v20  ;;  %457 = vmatpush.bf16.msrb.mxu3 %v809_v41 }
  0x1d   :  { %409 = vmatpush.bf16.msrb.mxu2 %v800_v34 }
  0x1e   :  { %690 = vmatmul.msk.bf16.gmra.mxu3 %vm135_vm0, %v63_v30 }
  0x20   :  { %458 = vmatpush.bf16.msrb.mxu3 %v808_v42 }
  0x21   :  { %410 = vmatpush.bf16.msrb.mxu2 %v799_v36 }
  0x24   :  { %459 = vmatpush.bf16.msrb.mxu3 %v807_v43 }
  0x25   :  { %411 = vmatpush.bf16.msrb.mxu2 %v798_v38 }
  0x28   :  { %460 = vmatpush.bf16.msrb.mxu3 %v806_v44 }
  0x29   :  { %412 = vmatpush.bf16.msrb.mxu2 %v797_v40 }
  0x2b   :  { %692 = vmatmul.msk.bf16.gmra.mxu1 %vm135_vm0, %v57_v17 }
  0x2c   :  { %688 = vmatmul.msk.bf16.gmra.mxu2 %vm135_vm0, %v61_v23  ;;  %461 = vmatpush.bf16.msrb.mxu3 %v805_v45 }
  0x3b   :  { %693 = vmatmul.msk.bf16.gmra.mxu1 %vm135_vm0, %v58_v8 }
  0x4b   :  { %694 = vmatmul.msk.bf16.gmra.mxu1 %vm135_vm0, %v59_v14 }
  0x5b   :  { %695 = vmatmul.msk.bf16.gmra.mxu1 %vm135_vm0, %v60_v20 }
  0x6b   :  { %696 = vmatmul.msk.bf16.gmra.mxu1 %vm135_vm0, %v61_v23 }
  0x7b   :  { %697 = vmatmul.msk.bf16.gmra.mxu1 %vm135_vm0, %v62_v26 }
  0x88   :  { %v169_v47 = vpop.f32.mrf.mxu0  ;;  %v179_v48 = vpop.f32.mrf.mxu1 }
  0x89   :  { %v170_v50 = vadd.f32 %v169_v47, %v977_v49  ;;  %v180_v11 = vadd.f32 %v179_v48, %v977_v49 }
  0x8b   :  { %698 = vmatmul.msk.bf16.gmra.mxu1 %vm135_vm0, %v63_v30  ;;  %v258_v53 = vmax.f32 %v170_v50, 0.0  ;;  %v266_v17 = vmax.f32 %v180_v11, 0.0 }
  0x8f   :  { %v184_v8 = vpop.f32.mrf.mxu2 }
  0x90   :  { %v171_v51 = vpop.f32.mrf.mxu0  ;;  %v181_v52 = vpop.f32.mrf.mxu1  ;;  %v185_v24 = vadd.f32 %v184_v8, %v977_v49 }
  0x91   :  { %v172_v54 = vadd.f32 %v171_v51, %v977_v49  ;;  %v182_v10 = vadd.f32 %v181_v52, %v977_v49  ;;  %v199_v52 = vpop.f32.mrf.mxu3 }
  0x92   :  { %v270_v26 = vmax.f32 %v185_v24, 0.0 }
  0x93   :  { %v260_v55 = vmax.f32 %v172_v54, 0.0  ;;  %v268_v15 = vmax.f32 %v182_v10, 0.0 }
  0x95   :  { %v290_v56 = vpack.c.bf16 %v260_v55, %v258_v53  ;;  %v294_v20 = vpack.c.bf16 %v268_v15, %v266_v17  ;;  %v820_v17 = vld [vmem:[#allocation2 + $0xb8] sm:$0xff] }
  0x96   :  { %578 = vmatpush.bf16.msrb.mxu0 %v820_v17 }
  0x97   :  { %413 = vmatmul.bf16.vlgmr.msrb.gmra.mxu2 %v290_v56  ;;  %v186_v14 = vpop.f32.mrf.mxu2 }
  0x98   :  { %v174_v57 = vpop.f32.mrf.mxu0  ;;  %v218_v58 = vpop.f32.mrf.mxu1  ;;  %v187_v25 = vadd.f32 %v186_v14, %v977_v49 }
  0x99   :  { %v175_v60 = vadd.f32 %v174_v57, %v977_v49  ;;  %v219_v61 = vadd.f32 %v218_v58, %v982_v59 }
  0x9a   :  { %v272_v28 = vmax.f32 %v187_v25, 0.0  ;;  %v818_v25 = vld [vmem:[#allocation2 + $0xa8] sm:$0xff] }
  0x9b   :  { %v262_v0 = vmax.f32 %v175_v60, 0.0  ;;  %v259_v3 = vmax.f32 %v219_v61, 0.0 }
  0x9c   :  { %v296_v33 = vpack.c.bf16 %v272_v28, %v270_v26 }
  0x9f   :  { %v189_v23 = vpop.f32.mrf.mxu2 }
  0xa0   :  { %v176_v62 = vpop.f32.mrf.mxu0  ;;  %v220_v63 = vpop.f32.mrf.mxu1  ;;  %v190_v37 = vadd.f32 %v189_v23, %v977_v49 }
  0xa1   :  { %v177_v1 = vadd.f32 %v176_v62, %v977_v49  ;;  %v221_v2 = vadd.f32 %v220_v63, %v982_v59 }
  0xa2   :  { %v274_v40 = vmax.f32 %v190_v37, 0.0 }
  0xa3   :  { %v264_v4 = vmax.f32 %v177_v1, 0.0  ;;  %v261_v5 = vmax.f32 %v221_v2, 0.0 }
  0xa5   :  { %v291_v6 = vpack.c.bf16 %v261_v5, %v259_v3  ;;  %v292_v7 = vpack.c.bf16 %v264_v4, %v262_v0  ;;  %v201_v0 = vpop.f32.mrf.mxu3  ;;  %v200_v3 = vadd.f32 %v199_v52, %v977_v49 }
  0xa6   :  { %v202_v4 = vadd.f32 %v201_v0, %v977_v49 }
  0xa7   :  { %418 = vmatmul.bf16.gmra.mxu2 %v292_v7  ;;  %462 = vmatmul.bf16.vlgmr.msrb.gmra.mxu3 %v291_v6  ;;  %v191_v34 = vpop.f32.mrf.mxu2  ;;  %v282_v6 = vmax.f32 %v200_v3, 0.0 }
  0xa8   :  { %v223_v9 = vpop.f32.mrf.mxu1  ;;  %v192_v38 = vadd.f32 %v191_v34, %v977_v49  ;;  %v284_v8 = vmax.f32 %v202_v4, 0.0 }
  0xa9   :  { %v224_v12 = vadd.f32 %v223_v9, %v982_v59 }
  0xaa   :  { %v276_v42 = vmax.f32 %v192_v38, 0.0 }
  0xab   :  { %v263_v18 = vmax.f32 %v224_v12, 0.0 }
  0xac   :  { %v298_v47 = vpack.c.bf16 %v276_v42, %v274_v40  ;;  %v813_v40 = vld [vmem:[#allocation2 + $0x80] sm:$0xff] }
  0xad   :  { %v204_v5 = vpop.f32.mrf.mxu3 }
  0xaf   :  { %v194_v39 = vpop.f32.mrf.mxu2 }
  0xb0   :  { %v225_v13 = vpop.f32.mrf.mxu1  ;;  %v195_v53 = vadd.f32 %v194_v39, %v977_v49 }
  0xb1   :  { %v226_v16 = vadd.f32 %v225_v13, %v982_v59  ;;  %v302_v13 = vpack.c.bf16 %v284_v8, %v282_v6 }
  0xb2   :  { %v278_v55 = vmax.f32 %v195_v53, 0.0 }
  0xb3   :  { %v265_v19 = vmax.f32 %v226_v16, 0.0 }
  0xb5   :  { %v293_v21 = vpack.c.bf16 %v265_v19, %v263_v18  ;;  %v206_v16 = vpop.f32.mrf.mxu3  ;;  %v205_v18 = vadd.f32 %v204_v5, %v977_v49 }
  0xb6   :  { %v207_v19 = vadd.f32 %v206_v16, %v977_v49 }
  0xb7   :  { %423 = vmatmul.bf16.gmra.mxu2 %v294_v20  ;;  %467 = vmatmul.bf16.gmra.mxu3 %v293_v21  ;;  %v196_v51 = vpop.f32.mrf.mxu2  ;;  %v819_v20 = vld [vmem:[#allocation2 + $0xb0] sm:$0xff]  ;;  %v286_v21 = vmax.f32 %v205_v18, 0.0 }
  0xb8   :  { %v228_v22 = vpop.f32.mrf.mxu1  ;;  %v197_v54 = vadd.f32 %v196_v51, %v977_v49  ;;  %579 = vmatpush.bf16.msrb.mxu0 %v819_v20  ;;  %v288_v23 = vmax.f32 %v207_v19, 0.0 }
  0xb9   :  { %v229_v27 = vadd.f32 %v228_v22, %v982_v59 }
  0xba   :  { %v280_v57 = vmax.f32 %v197_v54, 0.0 }
  0xbb   :  { %v267_v31 = vmax.f32 %v229_v27, 0.0 }
  0xbc   :  { %v300_v63 = vpack.c.bf16 %v280_v57, %v278_v55  ;;  %580 = vmatpush.bf16.msrb.mxu0 %v818_v25 }
  0xc0   :  { %v230_v29 = vpop.f32.mrf.mxu1 }
  0xc1   :  { %v231_v30 = vadd.f32 %v230_v29, %v982_v59  ;;  %v304_v29 = vpack.c.bf16 %v288_v23, %v286_v21 }
  0xc3   :  { %v269_v32 = vmax.f32 %v231_v30, 0.0  ;;  %v817_v30 = vld [vmem:[#allocation2 + $0xa0] sm:$0xff] }
  0xc4   :  { %581 = vmatpush.bf16.msrb.mxu0 %v817_v30 }
  0xc5   :  { %v295_v35 = vpack.c.bf16 %v269_v32, %v267_v31  ;;  %v816_v32 = vld [vmem:[#allocation2 + $0x98] sm:$0xff] }
  0xc7   :  { %428 = vmatmul.bf16.gmra.mxu2 %v296_v33  ;;  %472 = vmatmul.bf16.gmra.mxu3 %v295_v35  ;;  %v815_v33 = vld [vmem:[#allocation2 + $0x90] sm:$0xff] }
  0xc8   :  { %v233_v36 = vpop.f32.mrf.mxu1  ;;  %582 = vmatpush.bf16.msrb.mxu0 %v816_v32 }
  0xc9   :  { %v234_v41 = vadd.f32 %v233_v36, %v982_v59  ;;  %v814_v36 = vld [vmem:[#allocation2 + $0x88] sm:$0xff] }
  0xcb   :  { %v271_v45 = vmax.f32 %v234_v41, 0.0 }
  0xcc   :  { %583 = vmatpush.bf16.msrb.mxu0 %v815_v33 }
  0xd0   :  { %v235_v43 = vpop.f32.mrf.mxu1  ;;  %584 = vmatpush.bf16.msrb.mxu0 %v814_v36 }
  0xd1   :  { %v236_v44 = vadd.f32 %v235_v43, %v982_v59 }
  0xd3   :  { %v273_v46 = vmax.f32 %v236_v44, 0.0 }
  0xd4   :  { %585 = vmatpush.bf16.msrb.mxu0 %v813_v40 }
  0xd5   :  { %v297_v48 = vpack.c.bf16 %v273_v46, %v271_v45  ;;  %v1017_v46 = vld [vmem:[%s1051_s4 + $0x2] ss:$0 sm:$0xff] }
  0xd7   :  { %433 = vmatmul.bf16.gmra.mxu2 %v298_v47  ;;  %477 = vmatmul.bf16.gmra.mxu3 %v297_v48 }
  0xd8   :  { %v238_v50 = vpop.f32.mrf.mxu1 }
  0xd9   :  { %v239_v56 = vadd.f32 %v238_v50, %v982_v59 }
  0xdb   :  { %v275_v61 = vmax.f32 %v239_v56, 0.0 }
  0xe0   :  { %v240_v58 = vpop.f32.mrf.mxu1 }
  0xe1   :  { %v241_v60 = vadd.f32 %v240_v58, %v982_v59 }
  0xe3   :  { %v277_v62 = vmax.f32 %v241_v60, 0.0 }
  0xe5   :  { %v299_v1 = vpack.c.bf16 %v277_v62, %v275_v61 }
  0xe7   :  { %438 = vmatmul.bf16.gmra.mxu2 %v300_v63  ;;  %482 = vmatmul.bf16.gmra.mxu3 %v299_v1 }
  0xe8   :  { %v243_v2 = vpop.f32.mrf.mxu1 }
  0xe9   :  { %v244_v7 = vadd.f32 %v243_v2, %v982_v59 }
  0xeb   :  { %v279_v11 = vmax.f32 %v244_v7, 0.0 }
  0xf0   :  { %v245_v9 = vpop.f32.mrf.mxu1 }
  0xf1   :  { %v246_v10 = vadd.f32 %v245_v9, %v982_v59 }
  0xf3   :  { %v281_v12 = vmax.f32 %v246_v10, 0.0 }
  0xf5   :  { %v301_v14 = vpack.c.bf16 %v281_v12, %v279_v11 }
  0xf7   :  { %443 = vmatmul.bf16.gmra.mxu2 %v302_v13  ;;  %487 = vmatmul.bf16.gmra.mxu3 %v301_v14 }
  0xf8   :  { %v248_v15 = vpop.f32.mrf.mxu1 }
  0xf9   :  { %v249_v22 = vadd.f32 %v248_v15, %v982_v59 }
  0xfb   :  { %v283_v27 = vmax.f32 %v249_v22, 0.0 }
 0x100   :  { %v250_v24 = vpop.f32.mrf.mxu1 }
 0x101   :  { %v251_v26 = vadd.f32 %v250_v24, %v982_v59 }
 0x103   :  { %v285_v28 = vmax.f32 %v251_v26, 0.0 }
 0x105   :  { %v303_v31 = vpack.c.bf16 %v285_v28, %v283_v27 }
 0x107   :  { %448 = vmatmul.bf16.gmra.mxu2 %v304_v29  ;;  %492 = vmatmul.bf16.gmra.mxu3 %v303_v31 }
 0x108   :  { %v253_v49 = vpop.f32.mrf.mxu1 }
 0x109   :  { %v254_v34 = vadd.f32 %v253_v49, %v982_v59 }
 0x10b   :  { %v287_v38 = vmax.f32 %v254_v34, 0.0 }
 0x110   :  { %v255_v35 = vpop.f32.mrf.mxu1 }
 0x111   :  { %v256_v37 = vadd.f32 %v255_v35, %v982_v59 }
 0x113   :  { %v289_v39 = vmax.f32 %v256_v37, 0.0 }
 0x115   :  { %v305_v41 = vpack.c.bf16 %v289_v39, %v287_v38 }
 0x117   :  { %497 = vmatmul.bf16.gmra.mxu3 %v305_v41 }
 0x11a   :  { %v414_v42 = vpop.f32.mrf.mxu2 }
 0x11b   :  { %v415_v47 = vadd.f32 %v1017_v46, %v414_v42 }
 0x122   :  { %v416_v43 = vpop.f32.mrf.mxu2 }
 0x123   :  { %v417_v59 = vadd.f32 %v1017_v46, %v416_v43 }
 0x12a   :  { %v419_v44 = vpop.f32.mrf.mxu2  ;;  %v463_v45 = vpop.f32.mrf.mxu3 }
 0x12b   :  { %v464_v48 = vadd.f32 %v463_v45, %v415_v47  ;;  %v420_v58 = vadd.f32 %v1017_v46, %v419_v44 }
 0x12d   :  { %v503_v53 = vmax.f32 %v464_v48, 0.0 }
 0x132   :  { %v421_v50 = vpop.f32.mrf.mxu2  ;;  %v465_v51 = vpop.f32.mrf.mxu3 }
 0x133   :  { %v466_v52 = vadd.f32 %v465_v51, %v417_v59  ;;  %v422_v60 = vadd.f32 %v1017_v46, %v421_v50 }
 0x135   :  { %v504_v54 = vmax.f32 %v466_v52, 0.0 }
 0x137   :  { %v519_v55 = vpack.c.bf16 %v504_v54, %v503_v53 }
 0x139   :  { %586 = vmatmul.bf16.vlgmr.msrb.gmra.mxu0 %v519_v55 }
 0x13a   :  { %v424_v56 = vpop.f32.mrf.mxu2  ;;  %v468_v57 = vpop.f32.mrf.mxu3 }
 0x13b   :  { %v469_v61 = vadd.f32 %v468_v57, %v420_v58  ;;  %v425_v6 = vadd.f32 %v1017_v46, %v424_v56 }
 0x13d   :  { %v505_v1 = vmax.f32 %v469_v61, 0.0 }
 0x142   :  { %v426_v62 = vpop.f32.mrf.mxu2  ;;  %v470_v63 = vpop.f32.mrf.mxu3 }
 0x143   :  { %v471_v0 = vadd.f32 %v470_v63, %v422_v60  ;;  %v427_v7 = vadd.f32 %v1017_v46, %v426_v62 }
 0x145   :  { %v506_v2 = vmax.f32 %v471_v0, 0.0 }
 0x147   :  { %v520_v3 = vpack.c.bf16 %v506_v2, %v505_v1 }
 0x149   :  { %591 = vmatmul.bf16.gmra.mxu0 %v520_v3 }
 0x14a   :  { %v429_v4 = vpop.f32.mrf.mxu2  ;;  %v473_v5 = vpop.f32.mrf.mxu3 }
 0x14b   :  { %v474_v8 = vadd.f32 %v473_v5, %v425_v6  ;;  %v430_v17 = vadd.f32 %v1017_v46, %v429_v4  ;;  %v830_v6 = vld [vmem:[%s1051_s4 + $0x3] ss:$0 sm:$0xff] }
 0x14d   :  { %v507_v12 = vmax.f32 %v474_v8, 0.0 }
 0x152   :  { %v431_v9 = vpop.f32.mrf.mxu2  ;;  %v475_v10 = vpop.f32.mrf.mxu3 }
 0x153   :  { %v476_v11 = vadd.f32 %v475_v10, %v427_v7  ;;  %v432_v18 = vadd.f32 %v1017_v46, %v431_v9 }
 0x155   :  { %v508_v13 = vmax.f32 %v476_v11, 0.0 }
 0x157   :  { %v521_v14 = vpack.c.bf16 %v508_v13, %v507_v12 }
 0x159   :  { %596 = vmatmul.bf16.gmra.mxu0 %v521_v14 }
 0x15a   :  { %v434_v15 = vpop.f32.mrf.mxu2  ;;  %v478_v16 = vpop.f32.mrf.mxu3 }
 0x15b   :  { %v479_v19 = vadd.f32 %v478_v16, %v430_v17  ;;  %v435_v28 = vadd.f32 %v1017_v46, %v434_v15 }
 0x15d   :  { %v509_v23 = vmax.f32 %v479_v19, 0.0 }
 0x162   :  { %v436_v20 = vpop.f32.mrf.mxu2  ;;  %v480_v21 = vpop.f32.mrf.mxu3 }
 0x163   :  { %v481_v22 = vadd.f32 %v480_v21, %v432_v18  ;;  %v437_v29 = vadd.f32 %v1017_v46, %v436_v20 }
 0x165   :  { %v510_v24 = vmax.f32 %v481_v22, 0.0 }
 0x167   :  { %v522_v25 = vpack.c.bf16 %v510_v24, %v509_v23 }
 0x169   :  { %601 = vmatmul.bf16.gmra.mxu0 %v522_v25 }
 0x16a   :  { %v483_v26 = vpop.f32.mrf.mxu3  ;;  %v439_v27 = vpop.f32.mrf.mxu2 }
 0x16b   :  { %v484_v30 = vadd.f32 %v483_v26, %v435_v28  ;;  %v440_v37 = vadd.f32 %v1017_v46, %v439_v27 }
 0x16d   :  { %v511_v32 = vmax.f32 %v484_v30, 0.0 }
 0x172   :  { %v485_v31 = vpop.f32.mrf.mxu3  ;;  %v441_v34 = vpop.f32.mrf.mxu2 }
 0x173   :  { %v486_v49 = vadd.f32 %v485_v31, %v437_v29  ;;  %v442_v39 = vadd.f32 %v1017_v46, %v441_v34 }
 0x175   :  { %v512_v33 = vmax.f32 %v486_v49, 0.0 }
 0x177   :  { %v523_v35 = vpack.c.bf16 %v512_v33, %v511_v32 }
 0x179   :  { %606 = vmatmul.bf16.gmra.mxu0 %v523_v35 }
 0x17a   :  { %v488_v36 = vpop.f32.mrf.mxu3  ;;  %v444_v38 = vpop.f32.mrf.mxu2 }
 0x17b   :  { %v489_v40 = vadd.f32 %v488_v36, %v440_v37  ;;  %v445_v48 = vadd.f32 %v1017_v46, %v444_v38 }
 0x17d   :  { %v513_v43 = vmax.f32 %v489_v40, 0.0 }
 0x182   :  { %v490_v41 = vpop.f32.mrf.mxu3  ;;  %v446_v47 = vpop.f32.mrf.mxu2 }
 0x183   :  { %v491_v42 = vadd.f32 %v490_v41, %v442_v39  ;;  %v447_v50 = vadd.f32 %v1017_v46, %v446_v47 }
 0x185   :  { %v514_v44 = vmax.f32 %v491_v42, 0.0 }
 0x187   :  { %v524_v45 = vpack.c.bf16 %v514_v44, %v513_v43 }
 0x189   :  { %611 = vmatmul.bf16.gmra.mxu0 %v524_v45 }
 0x18a   :  { %v493_v59 = vpop.f32.mrf.mxu3  ;;  %v449_v54 = vpop.f32.mrf.mxu2 }
 0x18b   :  { %v494_v51 = vadd.f32 %v493_v59, %v445_v48  ;;  %v450_v61 = vadd.f32 %v1017_v46, %v449_v54 }
 0x18d   :  { %v515_v55 = vmax.f32 %v494_v51, 0.0 }
 0x192   :  { %v495_v52 = vpop.f32.mrf.mxu3  ;;  %v451_v60 = vpop.f32.mrf.mxu2 }
 0x193   :  { %v496_v53 = vadd.f32 %v495_v52, %v447_v50  ;;  %v452_v62 = vadd.f32 %v1017_v46, %v451_v60 }
 0x195   :  { %v516_v56 = vmax.f32 %v496_v53, 0.0 }
 0x197   :  { %v525_v57 = vpack.c.bf16 %v516_v56, %v515_v55 }
 0x199   :  { %616 = vmatmul.bf16.gmra.mxu0 %v525_v57 }
 0x19a   :  { %v498_v58 = vpop.f32.mrf.mxu3 }
 0x19b   :  { %v499_v63 = vadd.f32 %v498_v58, %v450_v61 }
 0x19d   :  { %v517_v2 = vmax.f32 %v499_v63, 0.0  ;;  %v860_v63 = vmov 0  }
 0x19e   :  { %828 = vset.pattern.permute.xlu0 %v860_v63 }
 0x1a2   :  { %v500_v0 = vpop.f32.mrf.mxu3 }
 0x1a3   :  { %v501_v1 = vadd.f32 %v500_v0, %v452_v62  ;;  %v119_v62 = vld [vmem:[%s1052_s5] sm:$0xff] }
 0x1a4   :  { %653 = vperm.xlu0 %828, %v119_v62   ;;  %v114_v0 = vld [vmem:[%s1050_s3] sm:$0xff] }
 0x1a5   :  { %v518_v3 = vmax.f32 %v501_v1, 0.0  ;;  %v115_v1 = vpack.c.bf16 %v114_v0, %v114_v0 }
 0x1a7   :  { %v526_v4 = vpack.c.bf16 %v518_v3, %v517_v2 }
 0x1a9   :  { %621 = vmatmul.bf16.gmra.mxu0 %v526_v4 }
 0x1b6   :  { %v587_v5 = vpop.f32.mrf.mxu0 }
 0x1b7   :  { %v588_v7 = vadd.f32 %v830_v6, %v587_v5 }
 0x1b9   :  { %v627_v10 = vmax.f32 %v588_v7, 0.0 }
 0x1be   :  { %v589_v8 = vpop.f32.mrf.mxu0 }
 0x1bf   :  { %v590_v9 = vadd.f32 %v830_v6, %v589_v8 }
 0x1c1   :  { %v628_v11 = vmax.f32 %v590_v9, 0.0 }
 0x1c3   :  { %v643_v12 = vpack.c.bf16 %v628_v11, %v627_v10 }
 0x1c6   :  { %v592_v13 = vpop.f32.mrf.mxu0 }
 0x1c7   :  { %v593_v46 = vadd.f32 %v830_v6, %v592_v13 }
 0x1c9   :  { %v629_v16 = vmax.f32 %v593_v46, 0.0 }
 0x1ce   :  { %v594_v14 = vpop.f32.mrf.mxu0 }
 0x1cf   :  { %v595_v15 = vadd.f32 %v830_v6, %v594_v14 }
 0x1d1   :  { %v630_v17 = vmax.f32 %v595_v15, 0.0 }
 0x1d3   :  { %v644_v18 = vpack.c.bf16 %v630_v17, %v629_v16 }
 0x1d6   :  { %v597_v19 = vpop.f32.mrf.mxu0 }
 0x1d7   :  { %v598_v20 = vadd.f32 %v830_v6, %v597_v19 }
 0x1d9   :  { %v631_v23 = vmax.f32 %v598_v20, 0.0 }
 0x1de   :  { %v599_v21 = vpop.f32.mrf.mxu0 }
 0x1df   :  { %v600_v22 = vadd.f32 %v830_v6, %v599_v21 }
 0x1e1   :  { %v632_v24 = vmax.f32 %v600_v22, 0.0 }
 0x1e3   :  { %v645_v25 = vpack.c.bf16 %v632_v24, %v631_v23 }
 0x1e6   :  { %v602_v26 = vpop.f32.mrf.mxu0 }
 0x1e7   :  { %v603_v27 = vadd.f32 %v830_v6, %v602_v26 }
 0x1e9   :  { %v633_v30 = vmax.f32 %v603_v27, 0.0 }
 0x1ee   :  { %v604_v28 = vpop.f32.mrf.mxu0 }
 0x1ef   :  { %v605_v29 = vadd.f32 %v830_v6, %v604_v28 }
 0x1f1   :  { %v634_v31 = vmax.f32 %v605_v29, 0.0 }
 0x1f3   :  { %v646_v49 = vpack.c.bf16 %v634_v31, %v633_v30 }
 0x1f6   :  { %v607_v32 = vpop.f32.mrf.mxu0 }
 0x1f7   :  { %v608_v33 = vadd.f32 %v830_v6, %v607_v32 }
 0x1f9   :  { %v635_v36 = vmax.f32 %v608_v33, 0.0 }
 0x1fe   :  { %v609_v34 = vpop.f32.mrf.mxu0 }
 0x1ff   :  { %v610_v35 = vadd.f32 %v830_v6, %v609_v34 }
 0x201   :  { %v636_v37 = vmax.f32 %v610_v35, 0.0 }
 0x203   :  { %v647_v38 = vpack.c.bf16 %v636_v37, %v635_v36 }
 0x206   :  { %v612_v39 = vpop.f32.mrf.mxu0 }
 0x207   :  { %v613_v57 = vadd.f32 %v830_v6, %v612_v39 }
 0x209   :  { %v637_v60 = vmax.f32 %v613_v57, 0.0 }
 0x20e   :  { %v614_v40 = vpop.f32.mrf.mxu0 }
 0x20f   :  { %v615_v55 = vadd.f32 %v830_v6, %v614_v40 }
 0x211   :  { %v638_v58 = vmax.f32 %v615_v55, 0.0 }
 0x213   :  { %v648_v61 = vpack.c.bf16 %v638_v58, %v637_v60 }
 0x216   :  { %v617_v41 = vpop.f32.mrf.mxu0  ;;  %v654_v2 = vpop.permute.xlu0 %653 }
 0x217   :  { %v618_v52 = vadd.f32 %v830_v6, %v617_v41 }
 0x219   :  { %v639_v54 = vmax.f32 %v618_v52, 0.0 }
 0x21e   :  { %v619_v42 = vpop.f32.mrf.mxu0 }
 0x21f   :  { %v620_v50 = vadd.f32 %v830_v6, %v619_v42 }
 0x221   :  { %v640_v53 = vmax.f32 %v620_v50, 0.0 }
 0x223   :  { %v649_v56 = vpack.c.bf16 %v640_v53, %v639_v54 }
 0x226   :  { %v622_v43 = vpop.f32.mrf.mxu0 }
 0x227   :  { %v623_v44 = vadd.f32 %v830_v6, %v622_v43 }
 0x229   :  { %v641_v59 = vmax.f32 %v623_v44, 0.0 }
 0x22e   :  { %v624_v45 = vpop.f32.mrf.mxu0 }
 0x22f   :  { %v625_v47 = vadd.f32 %v830_v6, %v624_v45 }
 0x231   :  { %v642_v48 = vmax.f32 %v625_v47, 0.0 }
 0x233   :  { %v650_v51 = vpack.c.bf16 %v642_v48, %v641_v59 }
 0x235   :  { %656 = vmatpush.bf16.xpose.msra.mxu1 %v650_v51 }
 0x23d   :  { %657 = vmatpush.bf16.xpose.msra.mxu1 %v649_v56 }
 0x245   :  { %658 = vmatpush.bf16.xpose.msra.mxu1 %v648_v61 }
 0x24d   :  { %659 = vmatpush.bf16.xpose.msra.mxu1 %v647_v38 }
 0x255   :  { %660 = vmatpush.bf16.xpose.msra.mxu1 %v646_v49 }
 0x25d   :  { %661 = vmatpush.bf16.xpose.msra.mxu1 %v645_v25 }
 0x265   :  { %662 = vmatpush.bf16.xpose.msra.mxu1 %v644_v18 }
 0x26d   :  { %663 = vmatpush.bf16.xpose.msra.mxu1 %v643_v12 }
 0x274   :  { %664 = vmatmul.bf16.vlgmr.msra.gmra.mxu1 %v115_v1 }
 0x2f1   :  { %v665_v3 = vpop.f32.mrf.mxu1 }
 0x2f2   :  { %v666_v4 = vadd.f32 %v665_v3, %v654_v2 }
 0x2f4   :  { %669 = vst [vmem:[%s1053_s6] sm:$0xff] %v666_v4 }
 0x2f9   :  { %v667_v5 = vpop.f32.mrf.mxu1 }
 0x2fa   :  { %674 = vsyncpa [#allocation3], 1 }

</bundles_post_ra>
